<compile_context>
chip_gen: v7x
topology: tpu7x:2x2x1
jax: 0.10.0
libtpu: 0.0.40
codegen_flags: <defaults>
</compile_context>

<pallas_src>
import math
import jax
import jax.numpy as jnp
from jax.experimental import pallas as pl
from jax.experimental.pallas import tpu as pltpu

EPS = 1e-5


def make_kernel(B, L, Lout, Cin, Cout, Cr, stride, conv_shortcut):
    Lp = L + 2                 # per-batch padded length (one zero halo row each side)
    Mp = B * Lp                # rows of the padded, flattened input
    M1 = Mp - 2                # rows of the stride-1 conv1 output
    BLout = B * Lout           # rows of everything downstream of conv2
    n1 = float(B * L)
    n2 = float(BLout)
    f32 = jnp.float32
    bf16 = jnp.bfloat16

    def strided_rows(ref, start, n, s):
        if s == 1:
            return ref[pl.ds(start, n), :]
        return ref[pl.ds(start, n, stride=s), :]

    def gather_sub(ref, tap_off):
        # (B*Lout, C) slab = per-batch strided windows concatenated along rows.
        parts = [strided_rows(ref, b * Lp + tap_off, Lout, stride) for b in range(B)]
        return parts[0] if B == 1 else jnp.concatenate(parts, axis=0)

    def kernel(*refs):
        if conv_shortcut:
            (x_ref, vm_ref, g1_ref, b1_ref, w1_ref, a_ref, w2_ref, g2_ref, b2_ref,
             wse1_ref, wse2_ref, seg_ref, segT_ref, wsc_ref, gsc_ref, bsc_ref,
             out_ref, xs_scr, hp_scr) = refs
        else:
            (x_ref, vm_ref, g1_ref, b1_ref, w1_ref, a_ref, w2_ref, g2_ref, b2_ref,
             wse1_ref, wse2_ref, seg_ref, segT_ref,
             out_ref, xs_scr, hp_scr) = refs

        # ---- BN1: batch statistics per input channel (halo rows are zero, so the flat
        #      sums over Mp rows divided by B*L are exact; biased variance). ----
        xall = x_ref[...]                                         # (Mp, Cin) f32
        vm = vm_ref[...]                                          # (Mp, 1)   1 on data rows
        sum1 = jnp.sum(xall, axis=0, keepdims=True)
        sumsq1 = jnp.sum(xall * xall, axis=0, keepdims=True)
        mean1 = sum1 / n1
        # TODO(synk): single-pass E[x^2]-E[x]^2 variance (matches tolerance here); use a
        #             mean-subtracted second pass for large-magnitude production inputs.
        var1 = jnp.maximum(sumsq1 / n1 - mean1 * mean1, 0.0)
        scale1 = g1_ref[...] * jax.lax.rsqrt(var1 + EPS)
        shift1 = b1_ref[...] - mean1 * scale1

        # ---- BN1 + halo re-mask applied ONCE into scratch; taps only cast + matmul. ----
        xs_scr[...] = (xall * scale1 + shift1) * vm               # (Mp, Cin) f32

        # ---- conv1 (k=3, stride 1, pad 1): three shifted tap reads, bf16 MXU matmuls,
        #      f32 accumulation. ----
        h1 = (jnp.dot(xs_scr[pl.ds(0, M1), :].astype(bf16), w1_ref[0],
                      preferred_element_type=f32)
              + jnp.dot(xs_scr[pl.ds(1, M1), :].astype(bf16), w1_ref[1],
                        preferred_element_type=f32)
              + jnp.dot(xs_scr[pl.ds(2, M1), :].astype(bf16), w1_ref[2],
                        preferred_element_type=f32))              # (M1, Cout) f32

        # ---- PReLU + halo re-mask fused in one pass; rebuild per-batch zero halos for
        #      conv2 by zeroing ONLY rows 0 and Mp-1 (the masked store zeroes the rest). ----
        alpha = a_ref[...]                                        # (1, Cout)
        m1 = vm_ref[pl.ds(1, M1), :]                              # (M1, 1)
        hp_scr[pl.ds(0, 1), :] = jnp.zeros((1, Cout), f32)
        hp_scr[pl.ds(Mp - 1, 1), :] = jnp.zeros((1, Cout), f32)
        hp_scr[pl.ds(1, M1), :] = jnp.where(h1 > 0, h1, alpha * h1) * m1

        # ---- conv2 (k=3, pad 1, stride s) with the stride pushed into the tap reads:
        #      only B*Lout rows hit the MXU; no post-hoc subsample or mask needed. ----
        t0 = gather_sub(hp_scr, 0).astype(bf16)
        t1 = gather_sub(hp_scr, 1).astype(bf16)
        t2 = gather_sub(hp_scr, 2).astype(bf16)
        h2raw = (jnp.dot(t0, w2_ref[0], preferred_element_type=f32)
                 + jnp.dot(t1, w2_ref[1], preferred_element_type=f32)
                 + jnp.dot(t2, w2_ref[2], preferred_element_type=f32))   # (BLout, Cout) f32

        # ---- BN2: plain (unmasked) batch statistics over the strided output rows. ----
        mean2 = jnp.sum(h2raw, axis=0, keepdims=True) / n2
        var2 = jnp.maximum(jnp.sum(h2raw * h2raw, axis=0, keepdims=True) / n2
                           - mean2 * mean2, 0.0)
        scale2 = g2_ref[...] * jax.lax.rsqrt(var2 + EPS)
        shift2 = b2_ref[...] - mean2 * scale2
        h2 = h2raw * scale2 + shift2                              # (BLout, Cout) f32

        # ---- SE, fully batched over B: segment-mean matmul -> fc1 -> relu -> fc2 ->
        #      sigmoid -> broadcast gate back to rows via the transposed segment matrix. ----
        means = jnp.dot(seg_ref[...], h2, preferred_element_type=f32) * (1.0 / float(Lout))
        t = jnp.dot(means, wse1_ref[...], preferred_element_type=f32)    # (B, Cr)
        t = jnp.maximum(t, 0.0)
        t = jnp.dot(t, wse2_ref[...], preferred_element_type=f32)        # (B, Cout)
        gate = pl.reciprocal(1.0 + jnp.exp(-t), approx=True)             # sigmoid, EUP recip
        gate_rows = jnp.dot(segT_ref[...], gate, preferred_element_type=f32)  # (BLout, Cout)

        # ---- shortcut: identity strided subsample, or 1x1 conv (stride) + BN, both on
        #      the already-subsampled B*Lout rows; kept in f32 (adds into the residual). ----
        xsub = gather_sub(x_ref, 1)                               # (BLout, Cin) raw x rows
        if conv_shortcut:
            scraw = jnp.dot(xsub, wsc_ref[...], preferred_element_type=f32)
            mean_sc = jnp.sum(scraw, axis=0, keepdims=True) / n2
            var_sc = jnp.maximum(jnp.sum(scraw * scraw, axis=0, keepdims=True) / n2
                                 - mean_sc * mean_sc, 0.0)
            scale_sc = gsc_ref[...] * jax.lax.rsqrt(var_sc + EPS)
            shift_sc = bsc_ref[...] - mean_sc * scale_sc
            shortcut = scraw * scale_sc + shift_sc
        else:
            shortcut = xsub                                       # Cin == Cout

        # ---- gate, residual add, single consolidated output store. ----
        out_ref[...] = h2 * gate_rows + shortcut

    return kernel


def bottleneck_resse(x_ncl, params, in_channel, depth, stride):
    """Wrapper: PyTorch NCL input -> channels-last flattened Pallas kernel -> NCL output."""
    conv_shortcut = (in_channel != depth)
    x = jnp.transpose(x_ncl, (0, 2, 1)).astype(jnp.float32)       # (B, L, Cin)
    B, L, Cin = x.shape
    Cout = depth
    Cr = depth // 16
    Lout = (L - 1) // stride + 1
    Lp = L + 2
    Mp = B * Lp
    M1 = Mp - 2
    BLout = B * Lout

    # padded, batch-flattened input + masks / segment matrices (cheap layout plumbing)
    xp = jnp.pad(x, ((0, 0), (1, 1), (0, 0))).reshape(Mp, Cin)
    vmask = jnp.pad(jnp.ones((B, L, 1), jnp.float32),
                    ((0, 0), (1, 1), (0, 0))).reshape(Mp, 1)      # 1 on data rows, 0 on halos
    seg = (jnp.arange(B)[:, None] ==
           (jnp.arange(BLout)[None, :] // Lout)).astype(jnp.float32)   # (B, BLout)
    segT = jnp.transpose(seg)                                           # (BLout, B)

    bf16 = jnp.bfloat16
    inputs = [
        xp, vmask,
        params["g1"].reshape(1, Cin), params["b1"].reshape(1, Cin),
        jnp.transpose(params["w1"], (2, 1, 0)).astype(bf16),      # (3, Cin, Cout)
        params["alpha"].reshape(1, Cout),
        jnp.transpose(params["w2"], (2, 1, 0)).astype(bf16),      # (3, Cout, Cout)
        params["g2"].reshape(1, Cout), params["b2"].reshape(1, Cout),
        jnp.transpose(params["wse1"][:, :, 0], (1, 0)),           # (Cout, Cr) f32
        jnp.transpose(params["wse2"][:, :, 0], (1, 0)),           # (Cr, Cout) f32
        seg, segT,
    ]
    scratch_shapes = [
        pltpu.VMEM((Mp, Cin), jnp.float32),    # BN1+mask applied conv1 input
        pltpu.VMEM((Mp, Cout), jnp.float32),   # zero-haloed conv2 input (post PReLU)
    ]
    if conv_shortcut:
        inputs += [
            jnp.transpose(params["wsc"][:, :, 0], (1, 0)),        # (Cin, Cout) f32
            params["gsc"].reshape(1, Cout), params["bsc"].reshape(1, Cout),
        ]

    flops = (2 * M1 * 3 * Cin * Cout                              # conv1
             + 2 * BLout * 3 * Cout * Cout                        # conv2 (stride folded in)
             + (2 * BLout * Cin * Cout if conv_shortcut else 0)   # shortcut 1x1 conv
             + 4 * B * Cout * Cr                                  # SE fc1 + fc2
             + 4 * B * BLout * Cout)                              # segment mean + broadcast
    bytes_accessed = 4 * (Mp * Cin + BLout * Cout) + 2 * 3 * Cout * (Cin + Cout)
    cost = pl.CostEstimate(flops=flops, transcendentals=B * Cout,
                           bytes_accessed=bytes_accessed)

    kernel = make_kernel(B, L, Lout, Cin, Cout, Cr, stride, conv_shortcut)
    out = pl.pallas_call(
        kernel,
        out_shape=jax.ShapeDtypeStruct((BLout, Cout), jnp.float32),
        in_specs=[pl.BlockSpec(memory_space=pltpu.MemorySpace.VMEM)] * len(inputs),
        out_specs=pl.BlockSpec(memory_space=pltpu.MemorySpace.VMEM),
        scratch_shapes=scratch_shapes,
        cost_estimate=cost,
    )(*inputs)
    return jnp.transpose(out.reshape(B, Lout, Cout), (0, 2, 1))   # (B, Cout, Lout)


def init_params(key, in_channel, depth):
    Cr = depth // 16
    ks = jax.random.split(key, 11)

    def rnd(k, shape, scale):
        return jax.random.normal(k, shape, jnp.float32) * scale

    return {
        "g1": 1.0 + 0.1 * rnd(ks[0], (in_channel,), 1.0),
        "b1": 0.1 * rnd(ks[1], (in_channel,), 1.0),
        "w1": rnd(ks[2], (depth, in_channel, 3), 1.0 / math.sqrt(3 * in_channel)),
        "alpha": jnp.full((depth,), 0.25, jnp.float32),            # PReLU default init
        "w2": rnd(ks[3], (depth, depth, 3), 1.0 / math.sqrt(3 * depth)),
        "g2": 1.0 + 0.1 * rnd(ks[4], (depth,), 1.0),
        "b2": 0.1 * rnd(ks[5], (depth,), 1.0),
        "wse1": rnd(ks[6], (Cr, depth, 1), 1.0 / math.sqrt(depth)),
        "wse2": rnd(ks[7], (depth, Cr, 1), 1.0 / math.sqrt(Cr)),
        "wsc": rnd(ks[8], (depth, in_channel, 1), 1.0 / math.sqrt(in_channel)),
        "gsc": 1.0 + 0.1 * rnd(ks[9], (depth,), 1.0),
        "bsc": 0.1 * rnd(ks[10], (depth,), 1.0),
    }


def reference(x, p, in_channel, depth, stride):
    """Pure-JAX reference matching the PyTorch forward (training-mode BN)."""
    conv_shortcut = (in_channel != depth)

    def bn(y, g, b):
        mean = jnp.mean(y, axis=(0, 2), keepdims=True)
        var = jnp.mean((y - mean) ** 2, axis=(0, 2), keepdims=True)
        return (y - mean) / jnp.sqrt(var + EPS) * g[None, :, None] + b[None, :, None]

    def conv1d(y, w, s, pad):
        return jax.lax.conv_general_dilated(
            y, w, window_strides=(s,), padding=[(pad, pad)],
            dimension_numbers=("NCH", "OIH", "NCH"))

    h = bn(x, p["g1"], p["b1"])
    h = conv1d(h, p["w1"], 1, 1)
    h = jnp.where(h > 0, h, p["alpha"][None, :, None] * h)
    h = conv1d(h, p["w2"], stride, 1)
    h = bn(h, p["g2"], p["b2"])
    s = jnp.mean(h, axis=2, keepdims=True)
    s = conv1d(s, p["wse1"], 1, 0)
    s = jnp.maximum(s, 0.0)
    s = conv1d(s, p["wse2"], 1, 0)
    s = jax.nn.sigmoid(s)
    res = h * s
    if conv_shortcut:
        sc = bn(conv1d(x, p["wsc"], stride, 0), p["gsc"], p["bsc"])
    else:
        sc = x[:, :, ::stride]
    return res + sc


if __name__ == "__main__":
    key = jax.random.PRNGKey(0)
    B, L = 2, 16
    configs = [
        (32, 32, 1),   # in_channel == depth, stride 1 -> identity shortcut
        (32, 32, 2),   # in_channel == depth, stride 2 -> MaxPool1d(1, 2) shortcut
        (48, 32, 2),   # in_channel != depth           -> Conv1d(1x1, 2) + BN shortcut
    ]
    for (cin, depth, stride) in configs:
        key, kx, kp = jax.random.split(key, 3)
        x = jax.random.normal(kx, (B, cin, L), jnp.float32)        # PyTorch NCL input
        p = init_params(kp, cin, depth)
        out = jax.block_until_ready(bottleneck_resse(x, p, cin, depth, stride))
        ref = reference(x, p, cin, depth, stride)
        assert out.shape == ref.shape, (out.shape, ref.shape)
        err = float(jnp.max(jnp.abs(out - ref)))
        assert err < 5e-2, f"max abs err {err} (cin={cin}, depth={depth}, stride={stride})"
    print("KERNEL_OK")
</pallas_src>

<mosaic_0001>
module attributes {stable_mosaic.version = 11 : i64} {
  func.func @kernel(%arg0: memref<36x32xf32, #tpu.memory_space<vmem>>, %arg1: memref<36x1xf32, #tpu.memory_space<vmem>>, %arg2: memref<1x32xf32, #tpu.memory_space<vmem>>, %arg3: memref<1x32xf32, #tpu.memory_space<vmem>>, %arg4: memref<3x32x32xbf16, #tpu.memory_space<vmem>>, %arg5: memref<1x32xf32, #tpu.memory_space<vmem>>, %arg6: memref<3x32x32xbf16, #tpu.memory_space<vmem>>, %arg7: memref<1x32xf32, #tpu.memory_space<vmem>>, %arg8: memref<1x32xf32, #tpu.memory_space<vmem>>, %arg9: memref<32x2xf32, #tpu.memory_space<vmem>>, %arg10: memref<2x32xf32, #tpu.memory_space<vmem>>, %arg11: memref<2x32xf32, #tpu.memory_space<vmem>>, %arg12: memref<32x2xf32, #tpu.memory_space<vmem>>, %arg13: memref<32x32xf32, #tpu.memory_space<vmem>>, %arg14: memref<36x32xf32, #tpu.memory_space<vmem>>, %arg15: memref<36x32xf32, #tpu.memory_space<vmem>>) attributes {dimension_semantics = [], scalar_prefetch = 0 : i64, scratch_operands = 2 : i64, tpu.core_type = #tpu.core_type<tc>} {
    %c0 = arith.constant 0 : index
    %c0_0 = arith.constant 0 : index
    %0 = vector.load %arg0[%c0, %c0_0] : memref<36x32xf32, #tpu.memory_space<vmem>>, vector<36x32xf32>
    %c0_1 = arith.constant 0 : index
    %c0_2 = arith.constant 0 : index
    %1 = vector.load %arg1[%c0_1, %c0_2] : memref<36x1xf32, #tpu.memory_space<vmem>>, vector<36x1xf32>
    %cst = arith.constant dense<0.000000e+00> : vector<32xf32>
    %2 = vector.multi_reduction <add>, %0, %cst [0] : vector<36x32xf32> to vector<32xf32>
    %3 = vector.shape_cast %2 : vector<32xf32> to vector<1x32xf32>
    %4 = arith.mulf %0, %0 : vector<36x32xf32>
    %cst_3 = arith.constant dense<0.000000e+00> : vector<32xf32>
    %5 = vector.multi_reduction <add>, %4, %cst_3 [0] : vector<36x32xf32> to vector<32xf32>
    %6 = vector.shape_cast %5 : vector<32xf32> to vector<1x32xf32>
    %cst_4 = arith.constant 3.200000e+01 : f32
    %7 = vector.broadcast %cst_4 : f32 to vector<1x32xf32>
    %8 = arith.divf %3, %7 : vector<1x32xf32>
    %cst_5 = arith.constant 3.200000e+01 : f32
    %9 = vector.broadcast %cst_5 : f32 to vector<1x32xf32>
    %10 = arith.divf %6, %9 : vector<1x32xf32>
    %11 = arith.mulf %8, %8 : vector<1x32xf32>
    %12 = arith.subf %10, %11 : vector<1x32xf32>
    %cst_6 = arith.constant 0.000000e+00 : f32
    %13 = vector.broadcast %cst_6 : f32 to vector<1x32xf32>
    %14 = arith.maximumf %12, %13 : vector<1x32xf32>
    %c0_7 = arith.constant 0 : index
    %c0_8 = arith.constant 0 : index
    %15 = vector.load %arg2[%c0_7, %c0_8] : memref<1x32xf32, #tpu.memory_space<vmem>>, vector<1x32xf32>
    %cst_9 = arith.constant 9.99999974E-6 : f32
    %16 = vector.broadcast %cst_9 : f32 to vector<1x32xf32>
    %17 = arith.addf %14, %16 : vector<1x32xf32>
    %18 = math.rsqrt %17 : vector<1x32xf32>
    %19 = arith.mulf %15, %18 : vector<1x32xf32>
    %c0_10 = arith.constant 0 : index
    %c0_11 = arith.constant 0 : index
    %20 = vector.load %arg3[%c0_10, %c0_11] : memref<1x32xf32, #tpu.memory_space<vmem>>, vector<1x32xf32>
    %21 = arith.mulf %8, %19 : vector<1x32xf32>
    %22 = arith.subf %20, %21 : vector<1x32xf32>
    %23 = vector.broadcast %19 : vector<1x32xf32> to vector<36x32xf32>
    %24 = arith.mulf %0, %23 : vector<36x32xf32>
    %25 = vector.broadcast %22 : vector<1x32xf32> to vector<36x32xf32>
    %26 = arith.addf %24, %25 : vector<36x32xf32>
    %27 = vector.broadcast %1 : vector<36x1xf32> to vector<36x32xf32>
    %28 = arith.mulf %26, %27 : vector<36x32xf32>
    %c0_12 = arith.constant 0 : index
    %c0_13 = arith.constant 0 : index
    %29 = vector.load %arg14[%c0_12, %c0_13] : memref<36x32xf32, #tpu.memory_space<vmem>>, vector<36x32xf32>
    tpu.vector_store %arg14[%c0_12, %c0_13], %28 {strides = array<i32>} : memref<36x32xf32, #tpu.memory_space<vmem>>, vector<36x32xf32>,
    %c0_14 = arith.constant 0 : index
    %c0_15 = arith.constant 0 : index
    %30 = vector.load %arg14[%c0_14, %c0_15] : memref<36x32xf32, #tpu.memory_space<vmem>>, vector<34x32xf32>
    %31 = arith.truncf %30 : vector<34x32xf32> to vector<34x32xbf16>
    %c0_16 = arith.constant 0 : index
    %c0_17 = arith.constant 0 : index
    %c0_18 = arith.constant 0 : index
    %32 = vector.load %arg4[%c0_16, %c0_17, %c0_18] : memref<3x32x32xbf16, #tpu.memory_space<vmem>>, vector<1x32x32xbf16>
    %33 = vector.shape_cast %32 : vector<1x32x32xbf16> to vector<32x32xbf16>
    %cst_19 = arith.constant dense<0.000000e+00> : vector<34x32xf32>
    %34 = tpu.matmul %31, %33, %cst_19 {dimension_numbers = #tpu.dot_dimension_numbers<[1], [0], [0], [1], [0, 0, 1, 1], [], []>} : vector<34x32xbf16>, vector<32x32xbf16>, vector<34x32xf32> -> vector<34x32xf32>
    %c1 = arith.constant 1 : index
    %c0_20 = arith.constant 0 : index
    %35 = vector.load %arg14[%c1, %c0_20] : memref<36x32xf32, #tpu.memory_space<vmem>>, vector<34x32xf32>
    %36 = arith.truncf %35 : vector<34x32xf32> to vector<34x32xbf16>
    %c1_21 = arith.constant 1 : index
    %c0_22 = arith.constant 0 : index
    %c0_23 = arith.constant 0 : index
    %37 = vector.load %arg4[%c1_21, %c0_22, %c0_23] : memref<3x32x32xbf16, #tpu.memory_space<vmem>>, vector<1x32x32xbf16>
    %38 = vector.shape_cast %37 : vector<1x32x32xbf16> to vector<32x32xbf16>
    %cst_24 = arith.constant dense<0.000000e+00> : vector<34x32xf32>
    %39 = tpu.matmul %36, %38, %cst_24 {dimension_numbers = #tpu.dot_dimension_numbers<[1], [0], [0], [1], [0, 0, 1, 1], [], []>} : vector<34x32xbf16>, vector<32x32xbf16>, vector<34x32xf32> -> vector<34x32xf32>
    %40 = arith.addf %34, %39 : vector<34x32xf32>
    %c2 = arith.constant 2 : index
    %c0_25 = arith.constant 0 : index
    %41 = vector.load %arg14[%c2, %c0_25] : memref<36x32xf32, #tpu.memory_space<vmem>>, vector<34x32xf32>
    %42 = arith.truncf %41 : vector<34x32xf32> to vector<34x32xbf16>
    %c2_26 = arith.constant 2 : index
    %c0_27 = arith.constant 0 : index
    %c0_28 = arith.constant 0 : index
    %43 = vector.load %arg4[%c2_26, %c0_27, %c0_28] : memref<3x32x32xbf16, #tpu.memory_space<vmem>>, vector<1x32x32xbf16>
    %44 = vector.shape_cast %43 : vector<1x32x32xbf16> to vector<32x32xbf16>
    %cst_29 = arith.constant dense<0.000000e+00> : vector<34x32xf32>
    %45 = tpu.matmul %42, %44, %cst_29 {dimension_numbers = #tpu.dot_dimension_numbers<[1], [0], [0], [1], [0, 0, 1, 1], [], []>} : vector<34x32xbf16>, vector<32x32xbf16>, vector<34x32xf32> -> vector<34x32xf32>
    %46 = arith.addf %40, %45 : vector<34x32xf32>
    %c0_30 = arith.constant 0 : index
    %c0_31 = arith.constant 0 : index
    %47 = vector.load %arg5[%c0_30, %c0_31] : memref<1x32xf32, #tpu.memory_space<vmem>>, vector<1x32xf32>
    %c1_32 = arith.constant 1 : index
    %c0_33 = arith.constant 0 : index
    %48 = vector.load %arg1[%c1_32, %c0_33] : memref<36x1xf32, #tpu.memory_space<vmem>>, vector<34x1xf32>
    %cst_34 = arith.constant 0.000000e+00 : f32
    %49 = vector.broadcast %cst_34 : f32 to vector<1x32xf32>
    %c0_35 = arith.constant 0 : index
    %c0_36 = arith.constant 0 : index
    %50 = vector.load %arg15[%c0_35, %c0_36] : memref<36x32xf32, #tpu.memory_space<vmem>>, vector<1x32xf32>
    tpu.vector_store %arg15[%c0_35, %c0_36], %49 {strides = array<i32>} : memref<36x32xf32, #tpu.memory_space<vmem>>, vector<1x32xf32>,
    %cst_37 = arith.constant 0.000000e+00 : f32
    %51 = vector.broadcast %cst_37 : f32 to vector<1x32xf32>
    %c35 = arith.constant 35 : index
    %c0_38 = arith.constant 0 : index
    %52 = vector.load %arg15[%c35, %c0_38] : memref<36x32xf32, #tpu.memory_space<vmem>>, vector<1x32xf32>
    tpu.vector_store %arg15[%c35, %c0_38], %51 {strides = array<i32>} : memref<36x32xf32, #tpu.memory_space<vmem>>, vector<1x32xf32>,
    %cst_39 = arith.constant 0.000000e+00 : f32
    %53 = vector.broadcast %cst_39 : f32 to vector<34x32xf32>
    %54 = arith.cmpf ogt, %46, %53 : vector<34x32xf32>
    %55 = vector.broadcast %47 : vector<1x32xf32> to vector<34x32xf32>
    %56 = arith.mulf %55, %46 : vector<34x32xf32>
    %57 = arith.select %54, %46, %56 : vector<34x32xi1>, vector<34x32xf32>
    %58 = vector.broadcast %48 : vector<34x1xf32> to vector<34x32xf32>
    %59 = arith.mulf %57, %58 : vector<34x32xf32>
    %c1_40 = arith.constant 1 : index
    %c0_41 = arith.constant 0 : index
    %60 = vector.load %arg15[%c1_40, %c0_41] : memref<36x32xf32, #tpu.memory_space<vmem>>, vector<34x32xf32>
    tpu.vector_store %arg15[%c1_40, %c0_41], %59 {strides = array<i32>} : memref<36x32xf32, #tpu.memory_space<vmem>>, vector<34x32xf32>,
    %c0_42 = arith.constant 0 : index
    %c0_43 = arith.constant 0 : index
    %61 = vector.load %arg15[%c0_42, %c0_43] : memref<36x32xf32, #tpu.memory_space<vmem>>, vector<16x32xf32>
    %c18 = arith.constant 18 : index
    %c0_44 = arith.constant 0 : index
    %62 = vector.load %arg15[%c18, %c0_44] : memref<36x32xf32, #tpu.memory_space<vmem>>, vector<16x32xf32>
    %63 = tpu.concatenate %61, %62 in 0 : vector<16x32xf32>, vector<16x32xf32> -> vector<32x32xf32>
    %64 = arith.truncf %63 : vector<32x32xf32> to vector<32x32xbf16>
    %c1_45 = arith.constant 1 : index
    %c0_46 = arith.constant 0 : index
    %65 = vector.load %arg15[%c1_45, %c0_46] : memref<36x32xf32, #tpu.memory_space<vmem>>, vector<16x32xf32>
    %c19 = arith.constant 19 : index
    %c0_47 = arith.constant 0 : index
    %66 = vector.load %arg15[%c19, %c0_47] : memref<36x32xf32, #tpu.memory_space<vmem>>, vector<16x32xf32>
    %67 = tpu.concatenate %65, %66 in 0 : vector<16x32xf32>, vector<16x32xf32> -> vector<32x32xf32>
    %68 = arith.truncf %67 : vector<32x32xf32> to vector<32x32xbf16>
    %c2_48 = arith.constant 2 : index
    %c0_49 = arith.constant 0 : index
    %69 = vector.load %arg15[%c2_48, %c0_49] : memref<36x32xf32, #tpu.memory_space<vmem>>, vector<16x32xf32>
    %c20 = arith.constant 20 : index
    %c0_50 = arith.constant 0 : index
    %70 = vector.load %arg15[%c20, %c0_50] : memref<36x32xf32, #tpu.memory_space<vmem>>, vector<16x32xf32>
    %71 = tpu.concatenate %69, %70 in 0 : vector<16x32xf32>, vector<16x32xf32> -> vector<32x32xf32>
    %72 = arith.truncf %71 : vector<32x32xf32> to vector<32x32xbf16>
    %c0_51 = arith.constant 0 : index
    %c0_52 = arith.constant 0 : index
    %c0_53 = arith.constant 0 : index
    %73 = vector.load %arg6[%c0_51, %c0_52, %c0_53] : memref<3x32x32xbf16, #tpu.memory_space<vmem>>, vector<1x32x32xbf16>
    %74 = vector.shape_cast %73 : vector<1x32x32xbf16> to vector<32x32xbf16>
    %cst_54 = arith.constant dense<0.000000e+00> : vector<32x32xf32>
    %75 = tpu.matmul %64, %74, %cst_54 {dimension_numbers = #tpu.dot_dimension_numbers<[1], [0], [0], [1], [0, 0, 1, 1], [], []>} : vector<32x32xbf16>, vector<32x32xbf16>, vector<32x32xf32> -> vector<32x32xf32>
    %c1_55 = arith.constant 1 : index
    %c0_56 = arith.constant 0 : index
    %c0_57 = arith.constant 0 : index
    %76 = vector.load %arg6[%c1_55, %c0_56, %c0_57] : memref<3x32x32xbf16, #tpu.memory_space<vmem>>, vector<1x32x32xbf16>
    %77 = vector.shape_cast %76 : vector<1x32x32xbf16> to vector<32x32xbf16>
    %cst_58 = arith.constant dense<0.000000e+00> : vector<32x32xf32>
    %78 = tpu.matmul %68, %77, %cst_58 {dimension_numbers = #tpu.dot_dimension_numbers<[1], [0], [0], [1], [0, 0, 1, 1], [], []>} : vector<32x32xbf16>, vector<32x32xbf16>, vector<32x32xf32> -> vector<32x32xf32>
    %79 = arith.addf %75, %78 : vector<32x32xf32>
    %c2_59 = arith.constant 2 : index
    %c0_60 = arith.constant 0 : index
    %c0_61 = arith.constant 0 : index
    %80 = vector.load %arg6[%c2_59, %c0_60, %c0_61] : memref<3x32x32xbf16, #tpu.memory_space<vmem>>, vector<1x32x32xbf16>
    %81 = vector.shape_cast %80 : vector<1x32x32xbf16> to vector<32x32xbf16>
    %cst_62 = arith.constant dense<0.000000e+00> : vector<32x32xf32>
    %82 = tpu.matmul %72, %81, %cst_62 {dimension_numbers = #tpu.dot_dimension_numbers<[1], [0], [0], [1], [0, 0, 1, 1], [], []>} : vector<32x32xbf16>, vector<32x32xbf16>, vector<32x32xf32> -> vector<32x32xf32>
    %83 = arith.addf %79, %82 : vector<32x32xf32>
    %cst_63 = arith.constant dense<0.000000e+00> : vector<32xf32>
    %84 = vector.multi_reduction <add>, %83, %cst_63 [0] : vector<32x32xf32> to vector<32xf32>
    %85 = vector.shape_cast %84 : vector<32xf32> to vector<1x32xf32>
    %cst_64 = arith.constant 3.200000e+01 : f32
    %86 = vector.broadcast %cst_64 : f32 to vector<1x32xf32>
    %87 = arith.divf %85, %86 : vector<1x32xf32>
    %88 = arith.mulf %83, %83 : vector<32x32xf32>
    %cst_65 = arith.constant dense<0.000000e+00> : vector<32xf32>
    %89 = vector.multi_reduction <add>, %88, %cst_65 [0] : vector<32x32xf32> to vector<32xf32>
    %90 = vector.shape_cast %89 : vector<32xf32> to vector<1x32xf32>
    %cst_66 = arith.constant 3.200000e+01 : f32
    %91 = vector.broadcast %cst_66 : f32 to vector<1x32xf32>
    %92 = arith.divf %90, %91 : vector<1x32xf32>
    %93 = arith.mulf %87, %87 : vector<1x32xf32>
    %94 = arith.subf %92, %93 : vector<1x32xf32>
    %cst_67 = arith.constant 0.000000e+00 : f32
    %95 = vector.broadcast %cst_67 : f32 to vector<1x32xf32>
    %96 = arith.maximumf %94, %95 : vector<1x32xf32>
    %c0_68 = arith.constant 0 : index
    %c0_69 = arith.constant 0 : index
    %97 = vector.load %arg7[%c0_68, %c0_69] : memref<1x32xf32, #tpu.memory_space<vmem>>, vector<1x32xf32>
    %cst_70 = arith.constant 9.99999974E-6 : f32
    %98 = vector.broadcast %cst_70 : f32 to vector<1x32xf32>
    %99 = arith.addf %96, %98 : vector<1x32xf32>
    %100 = math.rsqrt %99 : vector<1x32xf32>
    %101 = arith.mulf %97, %100 : vector<1x32xf32>
    %c0_71 = arith.constant 0 : index
    %c0_72 = arith.constant 0 : index
    %102 = vector.load %arg8[%c0_71, %c0_72] : memref<1x32xf32, #tpu.memory_space<vmem>>, vector<1x32xf32>
    %103 = arith.mulf %87, %101 : vector<1x32xf32>
    %104 = arith.subf %102, %103 : vector<1x32xf32>
    %105 = vector.broadcast %101 : vector<1x32xf32> to vector<32x32xf32>
    %106 = arith.mulf %83, %105 : vector<32x32xf32>
    %107 = vector.broadcast %104 : vector<1x32xf32> to vector<32x32xf32>
    %108 = arith.addf %106, %107 : vector<32x32xf32>
    %c0_73 = arith.constant 0 : index
    %c0_74 = arith.constant 0 : index
    %109 = vector.load %arg11[%c0_73, %c0_74] : memref<2x32xf32, #tpu.memory_space<vmem>>, vector<2x32xf32>
    %cst_75 = arith.constant dense<0.000000e+00> : vector<2x32xf32>
    %110 = tpu.matmul %109, %108, %cst_75 {dimension_numbers = #tpu.dot_dimension_numbers<[1], [0], [0], [1], [0, 0, 1, 1], [], []>} : vector<2x32xf32>, vector<32x32xf32>, vector<2x32xf32> -> vector<2x32xf32>
    %cst_76 = arith.constant 6.250000e-02 : f32
    %111 = vector.broadcast %cst_76 : f32 to vector<2x32xf32>
    %112 = arith.mulf %110, %111 : vector<2x32xf32>
    %c0_77 = arith.constant 0 : index
    %c0_78 = arith.constant 0 : index
    %113 = vector.load %arg9[%c0_77, %c0_78] : memref<32x2xf32, #tpu.memory_space<vmem>>, vector<32x2xf32>
    %cst_79 = arith.constant dense<0.000000e+00> : vector<2x2xf32>
    %114 = tpu.matmul %112, %113, %cst_79 {dimension_numbers = #tpu.dot_dimension_numbers<[1], [0], [0], [1], [0, 0, 1, 1], [], []>} : vector<2x32xf32>, vector<32x2xf32>, vector<2x2xf32> -> vector<2x2xf32>
    %cst_80 = arith.constant 0.000000e+00 : f32
    %115 = vector.broadcast %cst_80 : f32 to vector<2x2xf32>
    %116 = arith.maximumf %114, %115 : vector<2x2xf32>
    %c0_81 = arith.constant 0 : index
    %c0_82 = arith.constant 0 : index
    %117 = vector.load %arg10[%c0_81, %c0_82] : memref<2x32xf32, #tpu.memory_space<vmem>>, vector<2x32xf32>
    %cst_83 = arith.constant dense<0.000000e+00> : vector<2x32xf32>
    %118 = tpu.matmul %116, %117, %cst_83 {dimension_numbers = #tpu.dot_dimension_numbers<[1], [0], [0], [1], [0, 0, 1, 1], [], []>} : vector<2x2xf32>, vector<2x32xf32>, vector<2x32xf32> -> vector<2x32xf32>
    %cst_84 = arith.constant 0.000000e+00 : f32
    %119 = vector.broadcast %cst_84 : f32 to vector<2x32xf32>
    %120 = arith.subf %119, %118 : vector<2x32xf32>
    %121 = math.exp %120 : vector<2x32xf32>
    %cst_85 = arith.constant 1.000000e+00 : f32
    %122 = vector.broadcast %cst_85 : f32 to vector<2x32xf32>
    %123 = arith.addf %122, %121 : vector<2x32xf32>
    %124 = tpu.reciprocal %123 {approx = true} : vector<2x32xf32> -> vector<2x32xf32>
    %c0_86 = arith.constant 0 : index
    %c0_87 = arith.constant 0 : index
    %125 = vector.load %arg12[%c0_86, %c0_87] : memref<32x2xf32, #tpu.memory_space<vmem>>, vector<32x2xf32>
    %cst_88 = arith.constant dense<0.000000e+00> : vector<32x32xf32>
    %126 = tpu.matmul %125, %124, %cst_88 {dimension_numbers = #tpu.dot_dimension_numbers<[1], [0], [0], [1], [0, 0, 1, 1], [], []>} : vector<32x2xf32>, vector<2x32xf32>, vector<32x32xf32> -> vector<32x32xf32>
    %c1_89 = arith.constant 1 : index
    %c0_90 = arith.constant 0 : index
    %127 = vector.load %arg0[%c1_89, %c0_90] : memref<36x32xf32, #tpu.memory_space<vmem>>, vector<16x32xf32>
    %c19_91 = arith.constant 19 : index
    %c0_92 = arith.constant 0 : index
    %128 = vector.load %arg0[%c19_91, %c0_92] : memref<36x32xf32, #tpu.memory_space<vmem>>, vector<16x32xf32>
    %129 = tpu.concatenate %127, %128 in 0 : vector<16x32xf32>, vector<16x32xf32> -> vector<32x32xf32>
    %130 = arith.mulf %108, %126 : vector<32x32xf32>
    %131 = arith.addf %130, %129 : vector<32x32xf32>
    %c0_93 = arith.constant 0 : index
    %c0_94 = arith.constant 0 : index
    %132 = vector.load %arg13[%c0_93, %c0_94] : memref<32x32xf32, #tpu.memory_space<vmem>>, vector<32x32xf32>
    tpu.vector_store %arg13[%c0_93, %c0_94], %131 {strides = array<i32>} : memref<32x32xf32, #tpu.memory_space<vmem>>, vector<32x32xf32>,
    return
  }
}

</mosaic_0001>

<bundles_post_ra>
// kernel: tpu_custom_call.1
= control target key start
LH: loop header
LB: loop body
LE: loop exit
PB: predicated region body
PF: predicated region fallthrough
CT: control target
= control target key end

     0   :  { %v1475_v2 = vmov 0   ;;  %v1476_v10 = vmov 0.0   ;;  %vm1477_vm0 = vmmov 0   ;;  %s1817_s0 = inlined_call_operand.vmem [shape: f32[36,32], index: 0, kind: input, shape index: {}]   ;;  %s1818_s1 = inlined_call_operand.vmem [shape: f32[36,1], index: 1, kind: input, shape index: {}]   ;;  %s1819_s2 = inlined_call_operand.vmem [shape: f32[1,32], index: 2, kind: input, shape index: {}]   ;;  %s1820_s3 = inlined_call_operand.vmem [shape: f32[1,32], index: 3, kind: input, shape index: {}]   ;;  %s1821_s4 = inlined_call_operand.vmem [shape: bf16[3,32,32], index: 4, kind: input, shape index: {}]   ;;  %s1822_s5 = inlined_call_operand.vmem [shape: f32[1,32], index: 5, kind: input, shape index: {}]   ;;  %s1823_s6 = inlined_call_operand.vmem [shape: bf16[3,32,32], index: 6, kind: input, shape index: {}]   ;;  %s1824_s7 = inlined_call_operand.vmem [shape: f32[1,32], index: 7, kind: input, shape index: {}]   ;;  %s1825_s8 = inlined_call_operand.vmem [shape: f32[1,32], index: 8, kind: input, shape index: {}]   ;;  %s1826_s9 = inlined_call_operand.vmem [shape: f32[32,2], index: 9, kind: input, shape index: {}]   ;;  %s1827_s10 = inlined_call_operand.vmem [shape: f32[2,32], index: 10, kind: input, shape index: {}]   ;;  %s1828_s11 = inlined_call_operand.vmem [shape: f32[2,32], index: 11, kind: input, shape index: {}]   ;;  %s1829_s12 = inlined_call_operand.vmem [shape: f32[32,2], index: 12, kind: input, shape index: {}]   ;;  %s1830_s13 = inlined_call_operand.hbm [shape: f32[32,32], index: 13, kind: output, shape index: {}]  }
   0x1   :  { %v53_v0 = vld [vmem:[%s1818_s1 + $0x10] sm:$0xff]  ;;  %v51_v1 = vld [vmem:[%s1818_s1] sm:$0xff]  ;;  %1430 = vset.pattern.permute.xlu1 %v1475_v2  ;;  %1429 = vset.pattern.permute.xlu0 %v1475_v2  ;;  %v54_v3 = vld [vmem:[%s1818_s1 + $0x18] sm:$0xff] }
   0x2   :  { %140 = vperm.xlu1 %1430, %v53_v0   ;;  %130 = vperm.xlu0 %1429, %v51_v1   ;;  %v52_v4 = vld [vmem:[%s1818_s1 + $0x8] sm:$0xff]  ;;  %v55_v6 = vld [vmem:[%s1818_s1 + $0x20] sm:$0xf]  ;;  %v440_v7 = vld [vmem:[%s1818_s1 + $0x11] sm:$0xff] }
   0x3   :  { %v438_v5 = vld [vmem:[%s1818_s1 + $0x1] sm:$0xff]  ;;  %v1431_v8 = vld [vmem:[%s1821_s4 + $0x10] sm:$0xff]   ;;  %1272 = vmatprep.subr.bf16.mxu0 %v1476_v10  ;;  %1391 = vmatprep.subr.bf16.mxu1 %v1476_v10  ;;  %v1432_v12 = vld [vmem:[%s1821_s4 + $0x18] sm:$0xff]  }
   0x4   :  { %v439_v9 = vld [vmem:[%s1818_s1 + $0x9] sm:$0xff]  ;;  %1273 = vmatpush3.bf16.msra.mxu0 %v1431_v8  ;;  %1393 = vmatpush3.bf16.msra.mxu1 %v1431_v8  ;;  %v442_v11 = vld [vmem:[%s1818_s1 + $0x21] sm:$0x3]  ;;  %v441_v13 = vld [vmem:[%s1818_s1 + $0x19] sm:$0xff] }
   0x5   :  { %1274 = vmatprep.subr.bf16.mxu0 %v1476_v10  ;;  %1392 = vmatprep.subr.bf16.mxu1 %v1476_v10 }
   0x6   :  { %145 = vperm.xlu1 %1430, %v54_v3   ;;  %135 = vperm.xlu0 %1429, %v52_v4  }
   0x7   :  { %1276 = vmatprep.mubr.msk.bf16.mxu0 %vm1477_vm0, %v1476_v10  ;;  %1280 = vmatprep.mubr.msk.bf16.mxu1 %vm1477_vm0, %v1476_v10 }
   0x8   :  { %1275 = vmatpush3.bf16.msra.mxu0 %v1432_v12  ;;  %1394 = vmatpush3.bf16.msra.mxu1 %v1432_v12 }
   0xa   :  { %469 = vperm.xlu1 %1430, %v438_v5   ;;  %150 = vperm.xlu0 %1429, %v55_v6  }
   0xe   :  { %479 = vperm.xlu1 %1430, %v440_v7   ;;  %474 = vperm.xlu0 %1429, %v439_v9  }
   0xf   :  { %18 = vsyncpa [#allocation5], 0  ;;  %1288 = vmatprep.subr.bf16.mxu0 %v1476_v10  ;;  %vm56_vm1 = vcmask 261120   ;;  %v46_v14 = vld [vmem:[%s1817_s0] sm:$0xff]  ;;  %v1603_v15 = vld [vmem:[%s1817_s0 + $0x8] sm:$0xff]  ;;  %vm64_vm2 = vcmask 257024   ;;  %v107_v60 = vlaneseq }
  0x10   :  { %v57_v16 = vsel %vm56_vm1, %v46_v14, 0.0  ;;  %v58_v17 = vsel %vm56_vm1, %v1603_v15, 0.0  ;;  %v73_v18 = vmul.f32 %v46_v14, %v46_v14  ;;  %v74_v19 = vmul.f32 %v1603_v15, %v1603_v15  ;;  %v48_v20 = vld [vmem:[%s1817_s0 + $0x10] sm:$0xff]  ;;  %v49_v26 = vld [vmem:[%s1817_s0 + $0x18] sm:$0xff]  ;;  %v50_v32 = vld [vmem:[%s1817_s0 + $0x20] sm:$0xf] }
  0x11   :  { %v59_v21 = vadd.f32 %v58_v17, %v57_v16  ;;  %v60_v22 = vsel %vm56_vm1, %v48_v20, 0.0  ;;  %v75_v23 = vmul.f32 %v48_v20, %v48_v20  ;;  %v62_v29 = vsel %vm56_vm1, %v49_v26, 0.0  ;;  %v99_v62 = vld [vmem:[%s1819_s2] sm:$0x1]  ;;  %s1479_s28 = smov [#allocation4]  }
  0x12   :  { %489 = vperm.xlu1 %1430, %v442_v11   ;;  %484 = vperm.xlu0 %1429, %v441_v13   ;;  %v78_v24 = vsel %vm56_vm1, %v73_v18, 0.0  ;;  %v79_v25 = vsel %vm56_vm1, %v74_v19, 0.0  ;;  %v76_v30 = vmul.f32 %v49_v26, %v49_v26  ;;  %v65_v35 = vsel %vm64_vm2, %v50_v32, 0.0  ;;  %v103_v3 = vld [vmem:[%s1820_s3] sm:$0x1]  ;;  %s1164_s29 = sshll.u32 %s1479_s28, 4  ;;  %s1165_s29 = int_to_ptr.vmem [resolvable:$true] %s1164_s29 }
  0x13   :  { %v61_v27 = vadd.f32 %v60_v22, %v59_v21  ;;  %v80_v28 = vadd.f32 %v79_v25, %v78_v24  ;;  %v81_v31 = vsel %vm56_vm1, %v75_v23, 0.0  ;;  %v77_v36 = vmul.f32 %v50_v32, %v50_v32  ;;  %s1451_s30 = scalar_lea.vmem %s1165_s29, 512  ;;  %p1456_p1 = scmp.lt.s32.totalorder %s1165_s29, %s1165_s29 }
  0x14   :  { %v83_v37 = vsel %vm56_vm1, %v76_v30, 0.0  ;;  %v108_v63 = vshrl.u32 %v107_v60, 7  ;;  %v1433_v30 = vld [vmem:[%s1821_s4] sm:$0xff]   ;;  %vm443_vm3 = vcmask 253952   ;;  %vm501_vm9 = vcmask 254976   ;;  %p1452_p0 = scmp.ne.s32.totalorder %s1165_s29, %s1451_s30  ;;  %p1457_p2 = scmp.lt.s32.totalorder %s1451_s30, %s1451_s30 }
  0x15   :  { %v63_v33 = vadd.f32 %v62_v29, %v61_v27  ;;  %v82_v34 = vadd.f32 %v81_v31, %v80_v28  ;;  %v85_v40 = vsel %vm64_vm2, %v77_v36, 0.0  ;;  %444 = vst.msk [vmem:[#allocation3] sm:$0x1] %vm443_vm3, %v1476_v10  ;;  %445 = vst.msk [vmem:[#allocation3 + $0x23] sm:$0x1] %vm443_vm3, %v1476_v10  ;;  %vm960_vm10 = vcmask 1041408  }
  0x16   :  { %v1630_v1 = vsub.s32 0, %v108_v63  ;;  %vm956_vm11 = vcmask 15360   ;;  %p1458_p3 = por %p1457_p2, %p1456_p1 }
  0x17   :  { %v66_v38 = vadd.f32 %v65_v35, %v63_v33  ;;  %v84_v39 = vadd.f32 %v83_v37, %v82_v34  ;;  %v1434_v34 = vld [vmem:[%s1821_s4 + $0x8] sm:$0xff]  }
  0x18   :  { %p1459_p4 = pnand %p1458_p3, %p1452_p0 }
  0x19   :  { %v67_v41 = vrot.slane %v66_v38, 4  ;;  %v86_v42 = vadd.f32 %v85_v40, %v84_v39  ;;  %v1435_v39 = vld [vmem:[%s1821_s4 + $0x20] sm:$0xff]  }
  0x1b   :  { %v68_v43 = vadd.f32 %v67_v41, %v66_v38  ;;  %v87_v44 = vrot.slane %v86_v42, 4 }
  0x1d   :  { %v69_v45 = vrot.slane %v68_v43, 2  ;;  %v88_v46 = vadd.f32 %v87_v44, %v86_v42  ;;  %v1436_v42 = vld [vmem:[%s1821_s4 + $0x28] sm:$0xff]  }
  0x1f   :  { %v70_v47 = vadd.f32 %v69_v45, %v68_v43  ;;  %v89_v48 = vrot.slane %v88_v46, 2 }
  0x21   :  { %v71_v49 = vrot.slane %v70_v47, 1  ;;  %v90_v50 = vadd.f32 %v89_v48, %v88_v46 }
  0x23   :  { %v72_v51 = vadd.f32 %v71_v49, %v70_v47  ;;  %v91_v52 = vrot.slane %v90_v50, 1 }
  0x25   :  { %v92_v53 = vadd.f32 %v91_v52, %v90_v50  ;;  %v94_v54 = vmul.f32 0.03125, %v72_v51 }
  0x27   :  { %v95_v55 = vmul.f32 0.03125, %v92_v53  ;;  %v96_v56 = vmul.f32 %v94_v54, %v94_v54 }
  0x29   :  { %v97_v57 = vsub.f32 %v95_v55, %v96_v56  ;;  %v1437_v56 = vld [vmem:[%s1823_s6 + $0x10] sm:$0xff]  }
  0x2a   :  { %1320 = vmatprep.subr.bf16.mxu1 %v1437_v56 }
  0x2b   :  { %v98_v58 = vmax.f32 %v97_v57, 0.0  ;;  %v1438_v57 = vld [vmem:[%s1823_s6 + $0x18] sm:$0xff]  }
  0x2d   :  { %v100_v59 = vadd.f32 1e-05, %v98_v58  ;;  %v1694_v58 = vld [vmem:[%s1823_s6] sm:$0xff]  }
  0x2f   :  { %1443 = vrsqrt.f32 %v100_v59 }
  0x39   :  { %v1444_v61 = vpop.eup %1443 }
  0x3a   :  { %v102_v0 = vmul.f32 %v1444_v61, %v99_v62 }
  0x3c   :  { %v104_v2 = vmul.f32 %v102_v0, %v94_v54  ;;  %v110_v5 = vrot.slane %v102_v0, %v1630_v1 }
  0x3e   :  { %v105_v4 = vsub.f32 %v103_v3, %v104_v2  ;;  %v114_v6 = vmul.f32 %v110_v5, %v48_v20  ;;  %v112_v8 = vmul.f32 %v110_v5, %v46_v14  ;;  %v115_v12 = vmul.f32 %v110_v5, %v49_v26 }
  0x3f   :  { %v113_v13 = vmul.f32 %v110_v5, %v1603_v15  ;;  %v116_v18 = vmul.f32 %v110_v5, %v50_v32 }
  0x40   :  { %v121_v7 = vrot.slane %v105_v4, %v1630_v1  ;;  %v1198_v4 = vld [vmem:[%s1822_s5] ss:$0 sm:$0xff] }
  0x42   :  { %v125_v9 = vadd.f32 %v121_v7, %v114_v6  ;;  %v123_v11 = vadd.f32 %v121_v7, %v112_v8  ;;  %v126_v22 = vadd.f32 %v121_v7, %v115_v12  ;;  %v124_v23 = vadd.f32 %v121_v7, %v113_v13 }
  0x43   :  { %v127_v27 = vadd.f32 %v121_v7, %v116_v18 }
  0x81   :  { %v141_v16 = vpop.permute.xlu1 %140  ;;  %v131_v17 = vpop.permute.xlu0 %130 }
  0x82   :  { %v155_v19 = vmul.f32 %v141_v16, %v125_v9  ;;  %v153_v21 = vmul.f32 %v131_v17, %v123_v11 }
  0x84   :  { %160 = vst.msk [vmem:[#allocation2 + $0x10] sm:$0xff] %vm56_vm1, %v155_v19  ;;  %158 = vst.msk [vmem:[#allocation2] sm:$0xff] %vm56_vm1, %v153_v21 }
  0x85   :  { %v146_v20 = vpop.permute.xlu1 %145  ;;  %v136_v24 = vpop.permute.xlu0 %135 }
  0x86   :  { %v156_v25 = vmul.f32 %v146_v20, %v126_v22  ;;  %v154_v14 = vmul.f32 %v136_v24, %v124_v23 }
  0x88   :  { %161 = vst.msk [vmem:[#allocation2 + $0x18] sm:$0xff] %vm56_vm1, %v156_v25  ;;  %159 = vst.msk [vmem:[#allocation2 + $0x8] sm:$0xff] %vm56_vm1, %v154_v14 }
  0x89   :  { %v151_v15 = vpop.permute.xlu0 %150  ;;  %v470_v9 = vpop.permute.xlu1 %469 }
  0x8a   :  { %v157_v26 = vmul.f32 %v151_v15, %v127_v27 }
  0x8b   :  { %v163_v38 = vld [vmem:[#allocation2] sm:$0xff]  ;;  %v165_v43 = vld [vmem:[#allocation2 + $0x10] sm:$0xff] }
  0x8c   :  { %162 = vst.msk [vmem:[#allocation2 + $0x20] sm:$0xf] %vm64_vm2, %v157_v26 }
  0x8d   :  { %v475_v17 = vpop.permute.xlu0 %474  ;;  %v480_v27 = vpop.permute.xlu1 %479 }
  0x8f   :  { %v175_v28 = vld [vmem:[#allocation2 + $0x1] sm:$0xff]  ;;  %v176_v29 = vld [vmem:[#allocation2 + $0x9] sm:$0xff]  ;;  %v177_v32 = vld [vmem:[#allocation2 + $0x11] sm:$0xff] }
  0x90   :  { %v180_v31 = vpack.c.bf16 %v176_v29, %v175_v28  ;;  %v164_v37 = vld [vmem:[#allocation2 + $0x8] sm:$0xff]  ;;  %v166_v44 = vld [vmem:[#allocation2 + $0x18] sm:$0xff] }
  0x91   :  { %v168_v41 = vpack.c.bf16 %v164_v37, %v163_v38  ;;  %v169_v45 = vpack.c.bf16 %v166_v44, %v165_v43  ;;  %v342_v48 = vld [vmem:[#allocation2 + $0x2] sm:$0xff]  ;;  %v343_v49 = vld [vmem:[#allocation2 + $0xa] sm:$0xff]  ;;  %v344_v52 = vld [vmem:[#allocation2 + $0x12] sm:$0xff]  ;;  %v485_v29 = vpop.permute.xlu0 %484 }
  0x92   :  { %1277 = vmatmul.mubr.msk.bf16.vlgmr.msra.gmra.mrb[0].mxu0 %vm56_vm1, %v180_v31  ;;  %v347_v50 = vpack.c.bf16 %v343_v49, %v342_v48  ;;  %v1440_v49 = vld [vmem:[%s1823_s6 + $0x8] sm:$0xff]  }
  0x93   :  { %v178_v33 = vld [vmem:[#allocation2 + $0x19] sm:$0xff]  ;;  %1289 = vmatpush3.bf16.msra.mxu0 %v1433_v30  ;;  %1292 = vmatprep.mubr.msk.bf16.mxu0 %vm1477_vm0, %v1476_v10  ;;  %v179_v36 = vld [vmem:[#allocation2 + $0x21] sm:$0x3] }
  0x94   :  { %v181_v35 = vpack.c.bf16 %v178_v33, %v177_v32  ;;  %1290 = vmatprep.subr.bf16.mxu0 %v1476_v10  ;;  %v182_v40 = vpack.c.bf16 %v179_v36, %v179_v36  ;;  %v167_v46 = vld [vmem:[#allocation2 + $0x20] sm:$0x3]  ;;  %v346_v54 = vld [vmem:[#allocation2 + $0x22] sm:$0x3] }
  0x95   :  { %v170_v47 = vpack.c.bf16 %v167_v46, %v167_v46  ;;  %v345_v51 = vld [vmem:[#allocation2 + $0x1a] sm:$0xff]  ;;  %v349_v55 = vpack.c.bf16 %v346_v54, %v346_v54 }
  0x96   :  { %1281 = vmatmul.mubr.msk.bf16.vlgmr.msra.gmra.mrb[0].mxu1 %vm56_vm1, %v181_v35  ;;  %v348_v53 = vpack.c.bf16 %v345_v51, %v344_v52  ;;  %v1441_v51 = vld [vmem:[%s1823_s6 + $0x20] sm:$0xff]  }
  0x97   :  { %1291 = vmatpush3.bf16.msra.mxu0 %v1434_v34  ;;  %1284 = vmatprep.mubr.msk.bf16.mxu1 %vm1477_vm0, %v1476_v10 }
  0x98   :  { %1304 = vmatprep.subr.bf16.mxu0 %v1476_v10  ;;  %1321 = vmatpush3.bf16.msra.mxu1 %v1437_v56 }
  0x99   :  { %1322 = vmatprep.subr.bf16.mxu1 %v1438_v57 }
  0x9c   :  { %1323 = vmatpush3.bf16.msra.mxu1 %v1438_v57  ;;  %v1442_v57 = vld [vmem:[%s1823_s6 + $0x28] sm:$0xff]  }
  0x9d   :  { %1328 = vmatprep.subr.bf16.mxu1 %v1694_v58 }
  0x9e   :  { %1285 = vmatmul.mubr.msk.bf16.gmra.mrb[4].mxu1 %vm56_vm1, %v182_v40  ;;  %1293 = vmatmul.mubr.msk.bf16.vlgmr.msra.gmra.mrb[0].mxu0 %vm56_vm1, %v168_v41  ;;  %v490_v41 = vpop.permute.xlu1 %489 }
  0x9f   :  { %1296 = vmatprep.mubr.msk.bf16.mxu0 %vm1477_vm0, %v1476_v10  ;;  %1305 = vmatpush3.bf16.msra.mxu0 %v1435_v39 }
  0xa0   :  { %1306 = vmatprep.subr.bf16.mxu0 %v1476_v10 }
  0xa3   :  { %1307 = vmatpush3.bf16.msra.mxu0 %v1436_v42 }
  0xa6   :  { %1297 = vmatmul.mubr.msk.bf16.gmra.mrb[4].mxu0 %vm56_vm1, %v169_v45 }
  0xa7   :  { %1300 = vmatprep.mubr.msk.bf16.mxu0 %vm1477_vm0, %v1476_v10 }
  0xae   :  { %1301 = vmatmul.mubr.msk.bf16.gmra.mrb[8].mxu0 %vm56_vm1, %v170_v47 }
  0xaf   :  { %1308 = vmatprep.mubr.msk.bf16.mxu0 %vm1477_vm0, %v1476_v10 }
  0xb6   :  { %1309 = vmatmul.mubr.msk.bf16.vlgmr.msra.gmra.mrb[0].mxu0 %vm56_vm1, %v347_v50 }
  0xb7   :  { %1312 = vmatprep.mubr.msk.bf16.mxu0 %vm1477_vm0, %v1476_v10 }
  0xbe   :  { %1313 = vmatmul.mubr.msk.bf16.gmra.mrb[4].mxu0 %vm56_vm1, %v348_v53 }
  0xbf   :  { %1316 = vmatprep.mubr.msk.bf16.mxu0 %vm1477_vm0, %v1476_v10 }
  0xc6   :  { %1317 = vmatmul.mubr.msk.bf16.gmra.mrb[8].mxu0 %vm56_vm1, %v349_v55 }
  0xc7   :  { %1352 = vmatprep.mubr.msk.f32.mxu0 %vm1477_vm0, %v1476_v10 }
 0x169   :  { %v251_v59 = vpop.f32.mrb[0].mxu1 }
 0x16a   :  { %v1282_v60 = vpop.f32.mrb[1].mxu1 }
 0x16b   :  { %v254_v61 = vpop.f32.mrb[2].mxu1 }
 0x16c   :  { %v1283_v62 = vpop.f32.mrb[3].mxu1 }
 0x16d   :  { %v1478_v62 = vmov 0.0|0.0  }
 0x16e   :  { %1379 = vmatprep.subr.bf16.mxu0 %v1478_v62 }
 0x171   :  { %v259_v63 = vpop.f32.mrb[4].mxu1 }
 0x172   :  { %v1286_v0 = vpop.f32.mrb[5].mxu1 }
 0x173   :  { %v262_v2 = vpop.f32.mrb[6].mxu1  ;;  %v878_v0 = vld [vmem:[%s1826_s9 + $0x8] sm:$0xff] }
 0x174   :  { %v1287_v3 = vpop.f32.mrb[7].mxu1 }
 0x189   :  { %v410_v5 = vpop.f32.mrb[0].mxu0 }
 0x18a   :  { %vm446_vm4 = vcmp.gt.f32.partialorder %v410_v5, 0.0  ;;  %v457_v6 = vmul.f32 %v1198_v4, %v410_v5  ;;  %v1310_v7 = vpop.f32.mrb[1].mxu0 }
 0x18b   :  { %v413_v8 = vpop.f32.mrb[2].mxu0 }
 0x18c   :  { %v462_v11 = vsel %vm446_vm4, %v410_v5, %v457_v6  ;;  %vm447_vm5 = vcmp.gt.f32.partialorder %v413_v8, 0.0  ;;  %v458_v12 = vmul.f32 %v1198_v4, %v413_v8  ;;  %v1311_v13 = vpop.f32.mrb[3].mxu0 }
 0x18d   :  { %v492_v16 = vmul.f32 %v470_v9, %v462_v11 }
 0x18e   :  { %v463_v18 = vsel %vm447_vm5, %v413_v8, %v458_v12 }
 0x18f   :  { %497 = vst.msk [vmem:[#allocation3 + $0x1] sm:$0xff] %vm56_vm1, %v492_v16  ;;  %v493_v19 = vmul.f32 %v475_v17, %v463_v18 }
 0x191   :  { %498 = vst.msk [vmem:[#allocation3 + $0x9] sm:$0xff] %vm56_vm1, %v493_v19  ;;  %v418_v21 = vpop.f32.mrb[4].mxu0 }
 0x192   :  { %v1395_v22 = vadd.f32 %v418_v21, %v251_v59  ;;  %v1314_v23 = vpop.f32.mrb[5].mxu0 }
 0x193   :  { %v421_v20 = vpop.f32.mrb[6].mxu0 }
 0x194   :  { %vm448_vm6 = vcmp.gt.f32.partialorder %v1395_v22, 0.0  ;;  %v459_v24 = vmul.f32 %v1395_v22, %v1198_v4  ;;  %v1396_v25 = vadd.f32 %v421_v20, %v254_v61  ;;  %v1315_v14 = vpop.f32.mrb[7].mxu0 }
 0x196   :  { %v464_v15 = vsel %vm448_vm6, %v1395_v22, %v459_v24  ;;  %vm449_vm7 = vcmp.gt.f32.partialorder %v1396_v25, 0.0  ;;  %v460_v26 = vmul.f32 %v1396_v25, %v1198_v4  ;;  %v509_v31 = vld [vmem:[#allocation3 + $0x1] sm:$0xff] }
 0x197   :  { %v494_v28 = vmul.f32 %v480_v27, %v464_v15  ;;  %v503_v48 = vld [vmem:[#allocation3] sm:$0xff] }
 0x198   :  { %v465_v30 = vsel %vm449_vm7, %v1396_v25, %v460_v26  ;;  %v510_v32 = vld [vmem:[#allocation3 + $0x9] sm:$0xff] }
 0x199   :  { %499 = vst.msk [vmem:[#allocation3 + $0x11] sm:$0xff] %vm56_vm1, %v494_v28  ;;  %v495_v33 = vmul.f32 %v485_v29, %v465_v30  ;;  %v426_v34 = vpop.f32.mrb[8].mxu0  ;;  %v513_v35 = vpack.c.bf16 %v510_v32, %v509_v31  ;;  %v504_v44 = vld [vmem:[#allocation3 + $0x8] sm:$0xff] }
 0x19a   :  { %v1397_v36 = vadd.f32 %v426_v34, %v259_v63  ;;  %v1318_v37 = vpop.f32.mrb[9].mxu0  ;;  %v507_v50 = vpack.c.bf16 %v504_v44, %v503_v48  ;;  %v515_v56 = vld [vmem:[#allocation3 + $0x2] sm:$0xff]  ;;  %v877_v63 = vld [vmem:[%s1826_s9] sm:$0xff] }
 0x19b   :  { %500 = vst.msk [vmem:[#allocation3 + $0x19] sm:$0xff] %vm56_vm1, %v495_v33  ;;  %v429_v38 = vpop.f32.mrb[10].mxu0  ;;  %1324 = vmatprep.mubr.msk.bf16.mxu1 %vm56_vm1, %v513_v35  ;;  %v1386_v2 = vpack.c.bf16 %v878_v0, %v877_v63  ;;  %v775_v44 = vld [vmem:[%s1824_s7] sm:$0x1]  ;;  %v880_v0 = vld [vmem:[%s1826_s9 + $0x18] sm:$0xff] }
 0x19c   :  { %vm450_vm8 = vcmp.gt.f32.partialorder %v1397_v36, 0.0  ;;  %v461_v39 = vmul.f32 %v1397_v36, %v1198_v4  ;;  %v1319_v40 = vpop.f32.mrb[11].mxu0  ;;  %v802_v63 = vld [vmem:[%s1828_s11] sm:$0x3] }
 0x19e   :  { %v466_v42 = vsel %vm450_vm8, %v1397_v36, %v461_v39 }
 0x19f   :  { %v496_v43 = vmul.f32 %v490_v41, %v466_v42 }
 0x1a0   :  { %v516_v53 = vld [vmem:[#allocation3 + $0xa] sm:$0xff] }
 0x1a1   :  { %502 = vst.msk [vmem:[#allocation3 + $0x21] sm:$0x3] %vm501_vm9, %v496_v43  ;;  %v519_v59 = vpack.c.bf16 %v516_v53, %v515_v56 }
 0x1a2   :  { %v511_v45 = vld [vmem:[#allocation3 + $0x13] sm:$0xff] }
 0x1a3   :  { %v505_v54 = vld [vmem:[#allocation3 + $0x12] sm:$0xff] }
 0x1a4   :  { %v517_v60 = vld [vmem:[#allocation3 + $0x14] sm:$0xff] }
 0x1a8   :  { %v512_v46 = vld [vmem:[#allocation3 + $0x1b] sm:$0xff] }
 0x1a9   :  { %v514_v47 = vpack.c.bf16 %v512_v46, %v511_v45  ;;  %v506_v52 = vld [vmem:[#allocation3 + $0x1a] sm:$0xff] }
 0x1aa   :  { %v508_v55 = vpack.c.bf16 %v506_v52, %v505_v54 }
 0x1ab   :  { %1325 = vmatmul.mubr.msk.bf16.vlgmr.msra.gmra.mrb[8].mxu1 %vm56_vm1, %v514_v47  ;;  %v779_v47 = vld [vmem:[%s1825_s8] sm:$0x1] }
 0x1ac   :  { %1332 = vmatprep.mubr.msk.bf16.mxu1 %vm56_vm1, %v507_v50  ;;  %1329 = vmatpush3.bf16.msra.mxu1 %v1694_v58  ;;  %v518_v58 = vld [vmem:[#allocation3 + $0x1c] sm:$0xff] }
 0x1ad   :  { %1330 = vmatprep.subr.bf16.mxu1 %v1440_v49  ;;  %v520_v61 = vpack.c.bf16 %v518_v58, %v517_v60 }
 0x1b0   :  { %1331 = vmatpush3.bf16.msra.mxu1 %v1440_v49 }
 0x1b1   :  { %1336 = vmatprep.subr.bf16.mxu1 %v1441_v51 }
 0x1b7   :  { %1333 = vmatmul.mubr.msk.bf16.vlgmr.msra.gmra.mrb[8].mxu1 %vm56_vm1, %v508_v55 }
 0x1b8   :  { %1340 = vmatprep.mubr.msk.bf16.mxu1 %vm56_vm1, %v519_v59  ;;  %1337 = vmatpush3.bf16.msra.mxu1 %v1441_v51 }
 0x1b9   :  { %1338 = vmatprep.subr.bf16.mxu1 %v1442_v57 }
 0x1bc   :  { %1339 = vmatpush3.bf16.msra.mxu1 %v1442_v57 }
 0x1bd   :  { %1385 = vmatprep.subr.bf16.mxu1 %v1478_v62 }
 0x1c3   :  { %1341 = vmatmul.mubr.msk.bf16.vlgmr.msra.gmra.mrb[8].mxu1 %vm56_vm1, %v520_v61 }
 0x1c4   :  { %1363 = vmatprep.mubr.msk.f32.mxu1 %vm1477_vm0, %v1476_v10  ;;  %1387 = vmatpush3.bf16.msra.mxu1 %v1386_v2 }
 0x1c5   :  { %1388 = vmatprep.subr.bf16.mxu1 %v1478_v62 }
 0x296   :  { %v1342_v3 = vpop.f32.mrb[8].mxu1 }
 0x297   :  { %v721_v4 = vpop.f32.mrb[9].mxu1  ;;  %v756_v8 = vmul.f32 %v1342_v3, %v1342_v3  ;;  %v743_v16 = vsel %vm56_vm1, %v1342_v3, 0.0 }
 0x298   :  { %v754_v5 = vmul.f32 %v721_v4, %v721_v4  ;;  %v1343_v6 = vpop.f32.mrb[10].mxu1  ;;  %v740_v9 = vsel %vm56_vm1, %v721_v4, 0.0 }
 0x299   :  { %v724_v7 = vpop.f32.mrb[11].mxu1  ;;  %v757_v18 = vmul.f32 %v1343_v6, %v1343_v6  ;;  %v761_v23 = vsel %vm56_vm1, %v756_v8, 0.0  ;;  %v745_v20 = vsel %vm56_vm1, %v1343_v6, 0.0 }
 0x29a   :  { %v741_v11 = vsel %vm56_vm1, %v724_v7, 0.0  ;;  %v755_v12 = vmul.f32 %v724_v7, %v724_v7  ;;  %v758_v17 = vsel %vm56_vm1, %v754_v5, 0.0  ;;  %v955_v5 = vld [vmem:[%s1827_s10] sm:$0x3] }
 0x29b   :  { %v742_v13 = vadd.f32 %v741_v11, %v740_v9  ;;  %v763_v14 = vsel %vm56_vm1, %v757_v18, 0.0  ;;  %v1039_v9 = vld [vmem:[%s1829_s12] sm:$0xff] }
 0x29c   :  { %v759_v19 = vsel %vm56_vm1, %v755_v12, 0.0 }
 0x29d   :  { %v744_v21 = vadd.f32 %v743_v16, %v742_v13  ;;  %v760_v22 = vadd.f32 %v759_v19, %v758_v17  ;;  %v1040_v19 = vld [vmem:[%s1829_s12 + $0x8] sm:$0xff] }
 0x29f   :  { %v746_v24 = vadd.f32 %v745_v20, %v744_v21  ;;  %v762_v25 = vadd.f32 %v761_v23, %v760_v22  ;;  %v1041_v21 = vld [vmem:[%s1829_s12 + $0x10] sm:$0xff]  ;;  %v1042_v22 = vld [vmem:[%s1829_s12 + $0x18] sm:$0xff] }
 0x2a0   :  { %v1144_v20 = vld [vmem:[%s1817_s0 + $0x9] sm:$0xff] }
 0x2a1   :  { %v747_v27 = vrot.slane %v746_v24, 4  ;;  %v764_v15 = vadd.f32 %v763_v14, %v762_v25  ;;  %v1143_v14 = vld [vmem:[%s1817_s0 + $0x1] sm:$0xff] }
 0x2a3   :  { %v748_v26 = vadd.f32 %v747_v27, %v746_v24  ;;  %v765_v28 = vrot.slane %v764_v15, 4 }
 0x2a5   :  { %v749_v29 = vrot.slane %v748_v26, 2  ;;  %v766_v30 = vadd.f32 %v765_v28, %v764_v15 }
 0x2a7   :  { %v750_v31 = vadd.f32 %v749_v29, %v748_v26  ;;  %v767_v32 = vrot.slane %v766_v30, 2  ;;  %v1146_v29 = vld [vmem:[%s1817_s0 + $0x1b] sm:$0xff] }
 0x2a9   :  { %v751_v33 = vrot.slane %v750_v31, 1  ;;  %v768_v34 = vadd.f32 %v767_v32, %v766_v30  ;;  %v1145_v32 = vld [vmem:[%s1817_s0 + $0x13] sm:$0xff] }
 0x2ab   :  { %v752_v35 = vadd.f32 %v751_v33, %v750_v31  ;;  %v769_v36 = vrot.slane %v768_v34, 1 }
 0x2ad   :  { %v753_v37 = vmul.f32 0.03125, %v752_v35  ;;  %v770_v38 = vadd.f32 %v769_v36, %v768_v34 }
 0x2af   :  { %v771_v39 = vmul.f32 0.03125, %v770_v38  ;;  %v772_v40 = vmul.f32 %v753_v37, %v753_v37 }
 0x2b1   :  { %v773_v41 = vsub.f32 %v771_v39, %v772_v40 }
 0x2b3   :  { %v774_v42 = vmax.f32 %v773_v41, 0.0 }
 0x2b5   :  { %v776_v43 = vadd.f32 1e-05, %v774_v42 }
 0x2b7   :  { %1445 = vrsqrt.f32 %v776_v43 }
 0x2c1   :  { %v1446_v45 = vpop.eup %1445 }
 0x2c2   :  { %v778_v46 = vmul.f32 %v1446_v45, %v775_v44 }
 0x2c4   :  { %v780_v48 = vmul.f32 %v778_v46, %v753_v37  ;;  %v786_v49 = vrot.slane %v778_v46, %v1630_v1 }
 0x2c6   :  { %v781_v50 = vsub.f32 %v779_v47, %v780_v48  ;;  %v789_v51 = vmul.f32 %v786_v49, %v724_v7  ;;  %v788_v52 = vmul.f32 %v786_v49, %v721_v4  ;;  %v790_v53 = vmul.f32 %v1342_v3, %v786_v49 }
 0x2c7   :  { %v791_v54 = vmul.f32 %v1343_v6, %v786_v49 }
 0x2c8   :  { %v796_v55 = vrot.slane %v781_v50, %v1630_v1  ;;  %v879_v1 = vld [vmem:[%s1826_s9 + $0x10] sm:$0xff] }
 0x2c9   :  { %v1389_v2 = vpack.c.bf16 %v880_v0, %v879_v1 }
 0x2ca   :  { %v799_v56 = vadd.f32 %v796_v55, %v789_v51  ;;  %v798_v57 = vadd.f32 %v796_v55, %v788_v52  ;;  %v1747_v59 = vadd.f32 %v796_v55, %v790_v53  ;;  %v801_v58 = vadd.f32 %v796_v55, %v791_v54 }
 0x2cb   :  { %1390 = vmatpush3.bf16.msra.mxu1 %v1389_v2 }
 0x2cc   :  { %v1380_v60 = vpack.c.bf16 %v799_v56, %v798_v57  ;;  %v1383_v61 = vpack.c.bf16 %v801_v58, %v1747_v59  ;;  %1366 = vmatprep.subr.mxu1 %v1476_v10 }
 0x2ce   :  { %1381 = vmatpush3.bf16.msra.mxu0 %v1380_v60 }
 0x2cf   :  { %1382 = vmatprep.subr.bf16.mxu0 %v1478_v62 }
 0x2d2   :  { %1384 = vmatpush3.bf16.msra.mxu0 %v1383_v61 }
 0x2d5   :  { %1353 = vmatmul.mubr.msk.f32.vlgmr.msra.gmra.mrb[12].mxu0 %vm56_vm1, %v802_v63 }
 0x3a8   :  { %v872_v62 = vpop.f32.mrb[12].mxu0 }
 0x3a9   :  { %v876_v3 = vmul.f32 0.0625, %v872_v62  ;;  %v1354_v4 = vpop.f32.mrb[13].mxu0 }
 0x3ab   :  { %1364 = vmatmul.mubr.msk.f32.vlgmr.msra.gmra.mrb[12].mxu1 %vm56_vm1, %v876_v3 }
 0x3ac   :  { %1368 = vmatprep.mubr.msk.f32.mxu1 %vm1477_vm0, %v1476_v10  ;;  %1367 = vmatpush3.msk.msra.mxu1 %vm960_vm10, %v955_v5 }
 0x47e   :  { %v950_v6 = vpop.f32.mrb[12].mxu1 }
 0x47f   :  { %v954_v7 = vmax.f32 %v950_v6, 0.0  ;;  %v1365_v8 = vpop.f32.mrb[13].mxu1 }
 0x481   :  { %1369 = vmatmul.mubr.msk.f32.vlgmr.msra.gmra.mrb[14].mxu1 %vm956_vm11, %v954_v7 }
 0x482   :  { %1373 = vmatprep.mubr.msk.f32.mxu1 %vm956_vm11, %v1039_v9 }
 0x554   :  { %v1030_v10 = vpop.f32.mrb[14].mxu1 }
 0x555   :  { %v1034_v11 = vsub.f32 0.0, %v1030_v10  ;;  %v1370_v12 = vpop.f32.mrb[15].mxu1 }
 0x557   :  { %v1035_v13 = vmul.f32 1.442695, %v1034_v11 }
 0x559   :  { %1447 = vpow2.f32 %v1035_v13 }
 0x563   :  { %v1448_v16 = vpop.eup %1447 }
 0x564   :  { %v1037_v17 = vadd.f32 1.0, %v1448_v16 }
 0x566   :  { %1449 = vrcp.f32 %v1037_v17 }
 0x570   :  { %v1450_v18 = vpop.eup %1449 }
 0x571   :  { %1371 = vmatprep.subr.msk.mxu1 %vm960_vm10, %v1450_v18 }
 0x572   :  { %1372 = vmatpush3.msk.msra.mxu1 %vm960_vm10, %v1450_v18 }
 0x573   :  { %1374 = vmatmul.mubr.msk.f32.vlgmr.msra.gmra.mrb[16].mxu1 %vm956_vm11, %v1040_v19 }
 0x574   :  { %1376 = vmatprep.mubr.msk.f32.mxu1 %vm956_vm11, %v1041_v21 }
 0x577   :  { %1377 = vmatmul.mubr.msk.f32.gmra.mrb[18].mxu1 %vm956_vm11, %v1042_v22 }
 0x646   :  { %v1375_v23 = vpop.f32.mrb[16].mxu1 }
 0x647   :  { %v1148_v24 = vmul.f32 %v1375_v23, %v799_v56  ;;  %v1124_v25 = vpop.f32.mrb[17].mxu1 }
 0x648   :  { %v1147_v27 = vmul.f32 %v1124_v25, %v798_v57 }
 0x649   :  { %v1152_v15 = vadd.f32 %v1148_v24, %v1144_v20 }
 0x64a   :  { %v1151_v26 = vadd.f32 %v1147_v27, %v1143_v14  ;;  %v1378_v28 = vpop.f32.mrb[18].mxu1 }
 0x64b   :  { %1156 = vst.msk [vmem:[#allocation4 + $0x8] sm:$0xff] %vm56_vm1, %v1152_v15  ;;  %v1150_v30 = vmul.f32 %v1378_v28, %v801_v58  ;;  %v1134_v31 = vpop.f32.mrb[19].mxu1 }
 0x64c   :  { %1155 = vst.msk [vmem:[#allocation4] sm:$0xff] %vm56_vm1, %v1151_v26  ;;  %v1149_v33 = vmul.f32 %v1134_v31, %v1747_v59 }
 0x64d   :  { %v1154_v34 = vadd.f32 %v1150_v30, %v1146_v29 }
 0x64e   :  { %v1153_v35 = vadd.f32 %v1149_v33, %v1145_v32 }
 0x64f   :  { %1158 = vst.msk [vmem:[#allocation4 + $0x18] sm:$0xff] %vm56_vm1, %v1154_v34 }
 0x650   :  { %1157 = vst.msk [vmem:[#allocation4 + $0x10] sm:$0xff] %vm56_vm1, %v1153_v35 }
 0x651   :  { %1462 = shalt.err (!%p1459_p4)
}
 0x652   :  { %s1463_s15 = scalar_lea.hbm %s1830_s13, 512 }
 0x653   :  { %p1464_p5 = scmp.ne.s32.totalorder %s1830_s13, %s1463_s15  ;;  %p1467_p6 = scmp.lt.u32.totalorder %s1463_s15, %s1830_s13 }
 0x655   :  { %p1469_p7 = pnand %p1467_p6, %p1464_p5 }
 0x657   :  { %1472 = shalt.err (!%p1469_p7)
}
 0x658   :  { %s1480_s1 = smov 128   ;;  %s1481_s17 = smov 8  }
 0x659   :  { %1170 = dma.vmem_to_hbm [thread:$0]  %s1165_s29, 512, %s1830_s13, [#allocation5], %s1480_s1, %s1480_s1, %s1481_s17  }
 0x65a   :  { %1473 = dma.done.wait [#allocation5], 512  }
 0x65b   :  { %1474 = vsyncadd [#allocation5], 4294966784 }
 0x65c   :  { %1174 = vsyncpa [#allocation5], 1 }

</bundles_post_ra>
